<compile_context>
chip_gen: v7x
topology: tpu7x:2x2x1
jax: 0.10.0
libtpu: 0.0.40
codegen_flags: <defaults>
</compile_context>

<pallas_src>
import jax
import jax.numpy as jnp
from jax.experimental import pallas as pl
from jax.experimental.pallas import tpu as pltpu


_TINY_OUTPUT_BYTES = 512 * 1024        # below this: one full-batch grid step
_SPLIT_OUTPUT_BYTES = 4 * 1024 * 1024  # 2-TC split only pays off above this


def _pos_emb_kernel(w_ref, o_ref):
    # w_ref: (1, max_len*d_model) flattened table tile (constant block index)
    # o_ref: (BB, max_len*d_model) output block covering BB batch rows
    # Sublane broadcast of the single table row across the BB output rows.
    # TODO(synk): a stride-0 sublane-broadcast load would further cut vreg
    # pressure for very large blocks; secondary since HBM writeback binds.
    o_ref[...] = jnp.broadcast_to(w_ref[...], o_ref.shape)


def _vmem_capacity_bytes():
    try:
        info = pltpu.get_tpu_info()
        cap = int(getattr(info, "vmem_capacity_bytes", 0))
        if cap > 0:
            return cap
    except Exception:
        pass
    return 64 << 20  # conservative (v7x per-TensorCore)


def _num_tensorcores():
    try:
        dev = jax.devices()[0]
        kind = (getattr(dev, "device_kind", "") or "").lower()
        if "v7" in kind:
            return 2
        nc = getattr(dev, "num_cores", None)
        if nc:
            return int(nc)
    except Exception:
        pass
    return 1


def _align_bb(bb, batch_size, want_even_steps):
    """Round bb down to a multiple of 8 (f32 sublanes), preferring a divisor of
    batch (no ragged tail) and, on 2-TC chips, an even step count."""
    bb = max(8, (bb // 8) * 8)
    for require_even in ((True, False) if want_even_steps else (False,)):
        for cand in range(bb, 7, -8):
            if batch_size % cand:
                continue
            if require_even and (batch_size // cand) % 2:
                continue
            return cand
    return bb


def _choose_batch_block(batch_size, flat, itemsize, vmem_budget, num_tc):
    """Pick how many batch rows (bb) each grid step writes."""
    row_bytes = flat * itemsize
    table_bytes = flat * itemsize            # single-buffered constant input
    total_out_bytes = batch_size * row_bytes

    # Tiny problems, or batches too small to sublane-align: one full-batch step
    # (full-dim block satisfies the (8,128) rule and avoids padded stores).
    if total_out_bytes <= _TINY_OUTPUT_BYTES or batch_size < 8:
        return batch_size

    # VMEM: 1x table + 2x (double-buffered) output block within budget.
    avail = vmem_budget - table_bytes
    bb_vmem = avail // (2 * row_bytes) if avail > 0 else 1
    bb = int(min(batch_size, max(1, bb_vmem)))

    # Split across the two TensorCores only when the writeback is big enough
    # to amortize the extra grid steps (v7x); 1-TC chips keep the big block.
    want_even_steps = False
    if num_tc >= 2 and total_out_bytes >= _SPLIT_OUTPUT_BYTES and batch_size >= 16:
        bb = min(bb, batch_size // 2)
        want_even_steps = True

    return _align_bb(bb, batch_size, want_even_steps)


def positional_embedding(x, pe_weight, *, block_batch=None):
    """Pallas equivalent of PositionalEmbedding.forward.

    Args:
      x: any array whose leading dim is the batch size (only shape[0] is used).
      pe_weight: (max_len, d_model) float32 embedding table.
      block_batch: optional override of the batch rows written per grid step.

    Returns:
      (batch_size, max_len, d_model) = pe_weight broadcast over batch.
    """
    batch_size = x.shape[0]
    max_len, d_model = pe_weight.shape
    flat = max_len * d_model
    itemsize = jnp.dtype(pe_weight.dtype).itemsize

    # Lane-dense view of the table: (1, max_len*d_model).
    w_flat = pe_weight.reshape(1, flat)

    vmem_cap = _vmem_capacity_bytes()
    vmem_budget = min(max(12 << 20, vmem_cap // 4), 24 << 20)
    num_tc = _num_tensorcores()

    if block_batch is None:
        bb = _choose_batch_block(batch_size, flat, itemsize, vmem_budget, num_tc)
    else:
        bb = int(block_batch)
    bb = max(1, min(bb, batch_size))

    grid = (pl.cdiv(batch_size, bb),)

    # Explicit scoped-VMEM limit: 1x table (single-buffered) + 2x output block
    # plus headroom; never above ~3/4 of physical VMEM.
    footprint = flat * itemsize + 2 * bb * flat * itemsize
    vmem_limit = int(min(max(16 << 20, footprint + (2 << 20)), vmem_cap * 3 // 4))

    out_flat = pl.pallas_call(
        _pos_emb_kernel,
        out_shape=jax.ShapeDtypeStruct((batch_size, flat), pe_weight.dtype),
        grid_spec=pltpu.PrefetchScalarGridSpec(
            num_scalar_prefetch=0,
            grid=grid,
            in_specs=[
                # Constant block index -> fetched once; single-buffered since
                # double-buffering a never-changing block only wastes VMEM.
                pl.BlockSpec((1, flat), lambda b: (0, 0),
                             pipeline_mode=pl.Buffered(1)),
            ],
            out_specs=pl.BlockSpec((bb, flat), lambda b: (b, 0)),
        ),
        compiler_params=pltpu.CompilerParams(
            dimension_semantics=("parallel",),
            vmem_limit_bytes=vmem_limit),
        cost_estimate=pl.CostEstimate(
            flops=0,
            transcendentals=0,
            bytes_accessed=(1 + batch_size) * flat * itemsize),
    )(w_flat)

    return out_flat.reshape(batch_size, max_len, d_model)


if __name__ == "__main__":
    key = jax.random.PRNGKey(0)
    k_w, k_x, k_w2, k_x2 = jax.random.split(key, 4)

    # --- Case 1: module-default small shapes (batch=2, max_len=8, d_model=32).
    batch_size, max_len, d_model = 2, 8, 32
    # nn.Embedding default init: N(0, 1), float32.
    pe_weight = jax.random.normal(k_w, (max_len, d_model), dtype=jnp.float32)
    # x is only inspected for its batch size in forward(); use token ids.
    x = jax.random.randint(k_x, (batch_size, max_len), 0, max_len)
    out = jax.block_until_ready(positional_embedding(x, pe_weight))
    ref = jnp.broadcast_to(pe_weight[None, :, :], (batch_size, max_len, d_model))
    assert out.shape == (batch_size, max_len, d_model)
    assert out.dtype == jnp.float32
    assert jnp.array_equal(out, ref)

    # --- Case 2: sublane-aligned multi-row blocks across a multi-step grid
    # (exercises the single-buffered constant table input across grid steps).
    batch_size, max_len, d_model = 16, 64, 128
    pe_weight2 = jax.random.normal(k_w2, (max_len, d_model), dtype=jnp.float32)
    x2 = jax.random.randint(k_x2, (batch_size, max_len), 0, max_len)
    out2 = jax.block_until_ready(
        positional_embedding(x2, pe_weight2, block_batch=8))
    ref2 = jnp.broadcast_to(pe_weight2[None, :, :],
                            (batch_size, max_len, d_model))
    assert jnp.array_equal(out2, ref2)

    print("KERNEL_OK")
</pallas_src>

<mosaic_0001>
module attributes {stable_mosaic.version = 11 : i64} {
  func.func @_pos_emb_kernel(%arg0: i32, %arg1: memref<1x256xf32, #tpu.memory_space<vmem>>, %arg2: memref<2x256xf32, #tpu.memory_space<vmem>>) attributes {dimension_semantics = [#tpu.dimension_semantics<parallel>], iteration_bounds = array<i64: 1>, scalar_prefetch = 0 : i64, scratch_operands = 0 : i64, tpu.core_type = #tpu.core_type<tc>, window_params = [{pipeline_mode = #tpu.pipeline_mode<synchronous>, transform_indices = @transform_0, window_bounds = array<i64: 1, 256>}, {transform_indices = @transform_1, window_bounds = array<i64: 2, 256>}]} {
    %c0 = arith.constant 0 : index
    %c0_0 = arith.constant 0 : index
    %0 = vector.load %arg1[%c0, %c0_0] : memref<1x256xf32, #tpu.memory_space<vmem>>, vector<1x256xf32>
    %1 = vector.shape_cast %0 : vector<1x256xf32> to vector<1x256xf32>
    %2 = vector.broadcast %1 : vector<1x256xf32> to vector<2x256xf32>
    %c0_1 = arith.constant 0 : index
    %c0_2 = arith.constant 0 : index
    %3 = vector.load %arg2[%c0_1, %c0_2] : memref<2x256xf32, #tpu.memory_space<vmem>>, vector<2x256xf32>
    tpu.vector_store %arg2[%c0_1, %c0_2], %2 {strides = array<i32>} : memref<2x256xf32, #tpu.memory_space<vmem>>, vector<2x256xf32>,
    return
  }
  func.func @transform_0(%arg0: i32) -> (i32, i32) {
    %c0_i32 = arith.constant 0 : i32
    %c0_i32_0 = arith.constant 0 : i32
    %c0_i32_1 = arith.constant 0 : i32
    return %c0_i32, %c0_i32_0 : i32, i32
  }
  func.func @transform_1(%arg0: i32) -> (i32, i32) {
    %c0_i32 = arith.constant 0 : i32
    %c0_i32_0 = arith.constant 0 : i32
    return %arg0, %c0_i32 : i32, i32
  }
}

</mosaic_0001>

<bundles_post_ra>
// kernel: tpu_custom_call.1
= control target key start
LH: loop header
LB: loop body
LE: loop exit
PB: predicated region body
PF: predicated region fallthrough
CT: control target
= control target key end

     0   :  { %6 = vsyncpa [#allocation3], 0  ;;  %s143_s0 = inlined_call_operand.hbm [shape: f32[1,256], index: 0, kind: input, shape index: {}]   ;;  %s144_s1 = inlined_call_operand.hbm [shape: f32[2,256], index: 1, kind: output, shape index: {}]  }
   0x1   :  { %7 = vsyncpa [#allocation4], 0  ;;  %s107_s6 = smov [#allocation2]   ;;  %s59_s10 = scalar_lea.hbm %s143_s0, 32 }
   0x2   :  { %s14_s7 = sshll.u32 %s107_s6, 4  ;;  %p60_p0 = scmp.ne.s32.totalorder %s143_s0, %s59_s10  ;;  %s15_s7 = int_to_ptr.vmem [resolvable:$true] %s14_s7 }
   0x3   :  { %p63_p1 = scmp.lt.u32.totalorder %s59_s10, %s143_s0 }
   0x5   :  { %p65_p2 = pnand %p63_p1, %p60_p0 }
   0x7   :  { %68 = shalt.err (!%p65_p2)
}
   0x8   :  { %s69_s15 = scalar_lea.vmem %s15_s7, 32  ;;  %p74_p4 = scmp.lt.s32.totalorder %s15_s7, %s15_s7 }
   0x9   :  { %p70_p3 = scmp.ne.s32.totalorder %s15_s7, %s69_s15  ;;  %p75_p5 = scmp.lt.s32.totalorder %s69_s15, %s69_s15 }
   0xb   :  { %p76_p6 = por %p75_p5, %p74_p4 }
   0xd   :  { %p77_p7 = pnand %p76_p6, %p70_p3 }
   0xf   :  { %80 = shalt.err (!%p77_p7)
}
  0x10   :  { %17 = dma.hbm_to_vmem [thread:$0]  %s143_s0, 32, %s15_s7, [#allocation3]  }
  0x11   :  { %103 = dma.done.wait [#allocation3], 32  }
  0x12   :  { %104 = vsyncadd [#allocation3], 4294967264  ;;  %v23_v0 = vlaneseq  ;;  %v21_v4 = vld [vmem:[#allocation2] sm:$0x3]  ;;  %s108_s18 = smov [#allocation5]  }
  0x13   :  { %s47_s19 = sshll.u32 %s108_s18, 4  ;;  %s48_s19 = int_to_ptr.vmem [resolvable:$true] %s47_s19 }
  0x14   :  { %v24_v1 = vshrl.u32 %v23_v0, 7  ;;  %s81_s20 = scalar_lea.vmem %s48_s19, 64  ;;  %p86_p9 = scmp.lt.s32.totalorder %s48_s19, %s48_s19 }
  0x15   :  { %p82_p8 = scmp.ne.s32.totalorder %s48_s19, %s81_s20  ;;  %p87_p10 = scmp.lt.s32.totalorder %s81_s20, %s81_s20 }
  0x16   :  { %v25_v2 = vsub.s32 0, %v24_v1  ;;  %v29_v3 = vsub.s32 1, %v24_v1 }
  0x17   :  { %p88_p11 = por %p87_p10, %p86_p9 }
  0x18   :  { %v26_v5 = vrot.slane %v21_v4, %v25_v2  ;;  %v30_v6 = vrot.slane %v21_v4, %v29_v3 }
  0x19   :  { %p89_p12 = pnand %p88_p11, %p82_p8 }
  0x1a   :  { %v31_v7 = vcombine.low %v26_v5, %v30_v6 }
  0x1c   :  { %56 = vst.sshfl [vmem:[#allocation5] sm:$0x33 pattern:$0x76325410] %v31_v7 }
  0x1d   :  { %92 = shalt.err (!%p89_p12)
}
  0x1e   :  { %s93_s22 = scalar_lea.hbm %s144_s1, 64 }
  0x1f   :  { %p94_p13 = scmp.ne.s32.totalorder %s144_s1, %s93_s22  ;;  %p97_p0 = scmp.lt.u32.totalorder %s93_s22, %s144_s1 }
  0x21   :  { %p99_p1 = pnand %p97_p0, %p94_p13 }
  0x23   :  { %102 = shalt.err (!%p99_p1)
}
  0x24   :  { %50 = dma.vmem_to_hbm [thread:$0]  %s48_s19, 64, %s144_s1, [#allocation4]  }
  0x25   :  { %105 = dma.done.wait [#allocation4], 64  }
  0x26   :  { %106 = vsyncadd [#allocation4], 4294967232 }
  0x27   :  { %54 = vsyncpa [#allocation3], 1 }
  0x28   :  { %55 = vsyncpa [#allocation4], 1 }

</bundles_post_ra>
